<compile_context>
chip_gen: v5e
topology: v5e:2x2
jax: 0.10.0
libtpu: 0.0.40
codegen_flags: <defaults>
</compile_context>

<pallas_src>
import functools
import numpy as np
import jax
import jax.numpy as jnp
from jax.experimental import pallas as pl
from jax.experimental.pallas import tpu as pltpu


_SMALL_B = 256   # <= this: single-block, exact-f32 "acting" fast path


def _round_up(x, m):
    return ((x + m - 1) // m) * m


# ----------------------------------------------------------------------------
# One-time parameter preparation (hoisted out of the forward pass)
# ----------------------------------------------------------------------------
def prepare_params(params):
    """Fuse actor+critic heads, lane-pad to 128, and pre-cast bf16 MXU copies."""
    w1, b1, w2, b2, wa, ba, wc, bc = params
    H2 = w2.shape[1]
    A = wa.shape[1]
    head_cols = A + 1
    HEAD_W = max(128, _round_up(head_cols, 128))

    # fused head weight/bias: columns [0, A) = actor, column A = critic
    wh = (jnp.zeros((H2, HEAD_W), jnp.float32)
          .at[:, :A].set(wa.astype(jnp.float32))
          .at[:, A:head_cols].set(wc.astype(jnp.float32)))
    bh = (jnp.zeros((1, HEAD_W), jnp.float32)
          .at[:, :A].set(ba.astype(jnp.float32))
          .at[:, A:head_cols].set(bc.astype(jnp.float32)))

    b1 = b1.astype(jnp.float32)
    b2 = b2.astype(jnp.float32)

    return {
        "A": A,
        "HEAD_W": HEAD_W,
        # biases always stay f32 (VPU/EUP bias-add + tanh are f32)
        "f32": (w1.astype(jnp.float32), b1, w2.astype(jnp.float32), b2, wh, bh),
        "bf16": (w1.astype(jnp.bfloat16), b1, w2.astype(jnp.bfloat16), b2,
                 wh.astype(jnp.bfloat16), bh),
    }


# ----------------------------------------------------------------------------
# Forward pass
# ----------------------------------------------------------------------------
def discrete_actor_critic_forward(obs, prepped, compute_dtype=None,
                                  block_b=8192):
    """Returns (action_logits, value) exactly like the PyTorch module.

    compute_dtype:
      None         -> f32 (exact) for B <= 256, bf16 (fast MXU path) for B > 256
      jnp.float32  -> exact PyTorch parity (Precision.HIGHEST on the dots)
      jnp.bfloat16 -> single-pass MXU with f32 accumulation (~1e-2 rel. dev.)
    """
    B, obs_dim = obs.shape
    A = prepped["A"]
    HEAD_W = prepped["HEAD_W"]

    if compute_dtype is None:
        compute_dtype = jnp.float32 if B <= _SMALL_B else jnp.bfloat16
    cd = jnp.dtype(compute_dtype)
    use_f32 = (cd == jnp.dtype(jnp.float32))
    w1, b1, w2, b2, wh, bh = prepped["f32" if use_f32 else "bf16"]
    H1 = w1.shape[1]
    H2 = w2.shape[1]
    prec = jax.lax.Precision.HIGHEST if use_f32 else jax.lax.Precision.DEFAULT

    obs = obs.astype(jnp.float32)   # keep obs f32 in HBM; cast to cd in-kernel

    # ---- Batch tiling ------------------------------------------------------
    if B <= _SMALL_B:
        # latency path: single block, padded to a sublane multiple
        tb = _round_up(max(B, 1), 8)
        B_pad = tb
    else:
        # throughput path: big tiles, but always >= 2 grid steps so v7x can
        # shard the batch across both TensorCores.
        tb = min(block_b, _round_up(pl.cdiv(B, 2), 8))
        B_pad = _round_up(B, tb)
    grid_b = B_pad // tb
    if B_pad != B:
        obs = jnp.pad(obs, ((0, B_pad - B), (0, 0)))

    # ---- Kernel: fused backbone + one lane-dense head matmul ----------------
    def kernel(obs_ref, w1_ref, b1_ref, w2_ref, b2_ref, wh_ref, bh_ref,
               logits_ref, value_ref):
        x = obs_ref[...].astype(cd)                                   # (tb, obs_dim)
        h1 = jnp.tanh(
            jnp.dot(x, w1_ref[...], preferred_element_type=jnp.float32,
                    precision=prec) + b1_ref[...])                    # (tb, H1) f32
        h2 = jnp.tanh(
            jnp.dot(h1.astype(cd), w2_ref[...],
                    preferred_element_type=jnp.float32,
                    precision=prec) + b2_ref[...])                    # (tb, H2) f32
        # fused actor+critic head: one (tb, 128) MXU matmul, narrow stores
        y = jnp.dot(h2.astype(cd), wh_ref[...],
                    preferred_element_type=jnp.float32,
                    precision=prec) + bh_ref[...]                     # (tb, HEAD_W)
        logits_ref[...] = y[:, :A]
        value_ref[...] = y[:, A:A + 1]

    logits_pad, value_pad = pl.pallas_call(
        kernel,
        out_shape=(jax.ShapeDtypeStruct((B_pad, A), jnp.float32),
                   jax.ShapeDtypeStruct((B_pad, 1), jnp.float32)),
        grid_spec=pltpu.PrefetchScalarGridSpec(
            num_scalar_prefetch=0,
            grid=(grid_b,),
            in_specs=[
                pl.BlockSpec((tb, obs_dim), lambda i: (i, 0)),   # obs tiled on batch
                pl.BlockSpec((obs_dim, H1), lambda i: (0, 0)),   # weights stay resident
                pl.BlockSpec((1, H1), lambda i: (0, 0)),
                pl.BlockSpec((H1, H2), lambda i: (0, 0)),
                pl.BlockSpec((1, H2), lambda i: (0, 0)),
                pl.BlockSpec((H2, HEAD_W), lambda i: (0, 0)),
                pl.BlockSpec((1, HEAD_W), lambda i: (0, 0)),
            ],
            out_specs=(pl.BlockSpec((tb, A), lambda i: (i, 0)),
                       pl.BlockSpec((tb, 1), lambda i: (i, 0))),
        ),
        compiler_params=pltpu.CompilerParams(
            dimension_semantics=("parallel",),       # shard batch tiles (v7x 2 TCs)
            vmem_limit_bytes=32 * 1024 * 1024,       # explicit: safe on v5e/v6e/v7x
        ),
    )(obs, w1, b1, w2, b2, wh, bh)

    # .squeeze(-1) semantics for the critic value
    return logits_pad[:B], value_pad[:B, 0]


# ----------------------------------------------------------------------------
# Deterministic parameter init (orthogonal, gain=sqrt(2); bias = 0),
# mirroring init_weights applied to every nn.Linear. Weights stored (in, out).
# ----------------------------------------------------------------------------
def init_params(key, obs_dim, action_dim, hidden_sizes=(64, 64)):
    gain = float(np.sqrt(2.0))
    ortho = jax.nn.initializers.orthogonal(scale=gain)
    keys = jax.random.split(key, 4)
    sizes = [obs_dim] + list(hidden_sizes)

    w1 = ortho(keys[0], (sizes[0], sizes[1]), jnp.float32)
    b1 = jnp.zeros((1, sizes[1]), jnp.float32)
    w2 = ortho(keys[1], (sizes[1], sizes[2]), jnp.float32)
    b2 = jnp.zeros((1, sizes[2]), jnp.float32)
    wa = ortho(keys[2], (sizes[2], action_dim), jnp.float32)
    ba = jnp.zeros((1, action_dim), jnp.float32)
    wc = ortho(keys[3], (sizes[2], 1), jnp.float32)
    bc = jnp.zeros((1, 1), jnp.float32)
    return (w1, b1, w2, b2, wa, ba, wc, bc)


# Pure-numpy f32 reference for correctness checks (true f32 accumulation).
def reference_forward(obs, params):
    w1, b1, w2, b2, wa, ba, wc, bc = (np.asarray(p, dtype=np.float32)
                                      for p in params)
    obs = np.asarray(obs, dtype=np.float32)
    h1 = np.tanh(obs @ w1 + b1)
    h2 = np.tanh(h1 @ w2 + b2)
    return h2 @ wa + ba, (h2 @ wc + bc)[:, 0]


if __name__ == "__main__":
    obs_dim, action_dim, batch = 8, 4, 2

    key = jax.random.PRNGKey(0)
    k_obs, k_params, k_big = jax.random.split(key, 3)

    params = init_params(k_params, obs_dim, action_dim)
    prepped = prepare_params(params)          # one-time: fuse/pad/cast weights

    # --- small-batch (acting) fast path: exact f32 with HIGHEST precision ----
    obs = jax.random.normal(k_obs, (batch, obs_dim), dtype=jnp.float32)
    logits, value = discrete_actor_critic_forward(obs, prepped)
    jax.block_until_ready((logits, value))
    ref_logits, ref_value = reference_forward(obs, params)
    np.testing.assert_allclose(np.asarray(logits), ref_logits, rtol=1e-4, atol=1e-5)
    np.testing.assert_allclose(np.asarray(value), ref_value, rtol=1e-4, atol=1e-5)
    assert logits.shape == (batch, action_dim)
    assert value.shape == (batch,)

    # --- large-batch gridded path, explicit f32 (exact parity, ragged B) -----
    big_B = 1000
    obs_big = jax.random.normal(k_big, (big_B, obs_dim), dtype=jnp.float32)
    logits_b, value_b = discrete_actor_critic_forward(
        obs_big, prepped, compute_dtype=jnp.float32)
    jax.block_until_ready((logits_b, value_b))
    ref_logits_b, ref_value_b = reference_forward(obs_big, params)
    np.testing.assert_allclose(np.asarray(logits_b), ref_logits_b, rtol=1e-4, atol=1e-5)
    np.testing.assert_allclose(np.asarray(value_b), ref_value_b, rtol=1e-4, atol=1e-5)
    assert logits_b.shape == (big_B, action_dim)
    assert value_b.shape == (big_B,)

    # --- large-batch default path: bf16 MXU (f32 accumulation), grid_b >= 2 --
    logits_bf, value_bf = discrete_actor_critic_forward(obs_big, prepped)
    jax.block_until_ready((logits_bf, value_bf))
    np.testing.assert_allclose(np.asarray(logits_bf), ref_logits_b,
                               rtol=5e-2, atol=5e-2)
    np.testing.assert_allclose(np.asarray(value_bf), ref_value_b,
                               rtol=5e-2, atol=5e-2)

    print("KERNEL_OK")
</pallas_src>

<mosaic_0001>
module attributes {stable_mosaic.version = 11 : i64} {
  func.func @kernel(%arg0: i32, %arg1: memref<8x8xf32, #tpu.memory_space<vmem>>, %arg2: memref<8x64xf32, #tpu.memory_space<vmem>>, %arg3: memref<1x64xf32, #tpu.memory_space<vmem>>, %arg4: memref<64x64xf32, #tpu.memory_space<vmem>>, %arg5: memref<1x64xf32, #tpu.memory_space<vmem>>, %arg6: memref<64x128xf32, #tpu.memory_space<vmem>>, %arg7: memref<1x128xf32, #tpu.memory_space<vmem>>, %arg8: memref<8x4xf32, #tpu.memory_space<vmem>>, %arg9: memref<8x1xf32, #tpu.memory_space<vmem>>) attributes {dimension_semantics = [#tpu.dimension_semantics<parallel>], iteration_bounds = array<i64: 1>, scalar_prefetch = 0 : i64, scratch_operands = 0 : i64, tpu.core_type = #tpu.core_type<tc>, window_params = [{transform_indices = @transform_0, window_bounds = array<i64: 8, 8>}, {pipeline_mode = #tpu.pipeline_mode<synchronous>, transform_indices = @transform_1, window_bounds = array<i64: 8, 64>}, {pipeline_mode = #tpu.pipeline_mode<synchronous>, transform_indices = @transform_2, window_bounds = array<i64: 1, 64>}, {pipeline_mode = #tpu.pipeline_mode<synchronous>, transform_indices = @transform_3, window_bounds = array<i64: 64, 64>}, {pipeline_mode = #tpu.pipeline_mode<synchronous>, transform_indices = @transform_4, window_bounds = array<i64: 1, 64>}, {pipeline_mode = #tpu.pipeline_mode<synchronous>, transform_indices = @transform_5, window_bounds = array<i64: 64, 128>}, {pipeline_mode = #tpu.pipeline_mode<synchronous>, transform_indices = @transform_6, window_bounds = array<i64: 1, 128>}, {transform_indices = @transform_7, window_bounds = array<i64: 8, 4>}, {transform_indices = @transform_8, window_bounds = array<i64: 8, 1>}]} {
    %c0 = arith.constant 0 : index
    %c0_0 = arith.constant 0 : index
    %0 = vector.load %arg1[%c0, %c0_0] : memref<8x8xf32, #tpu.memory_space<vmem>>, vector<8x8xf32>
    %c0_1 = arith.constant 0 : index
    %c0_2 = arith.constant 0 : index
    %1 = vector.load %arg2[%c0_1, %c0_2] : memref<8x64xf32, #tpu.memory_space<vmem>>, vector<8x64xf32>
    %cst = arith.constant dense<0.000000e+00> : vector<8x64xf32>
    %2 = tpu.matmul %0, %1, %cst {dimension_numbers = #tpu.dot_dimension_numbers<[1], [0], [0], [1], [0, 0, 1, 1], [], []>, precision = #tpu.contract_precision<fp32>} : vector<8x8xf32>, vector<8x64xf32>, vector<8x64xf32> -> vector<8x64xf32>
    %c0_3 = arith.constant 0 : index
    %c0_4 = arith.constant 0 : index
    %3 = vector.load %arg3[%c0_3, %c0_4] : memref<1x64xf32, #tpu.memory_space<vmem>>, vector<1x64xf32>
    %4 = vector.broadcast %3 : vector<1x64xf32> to vector<8x64xf32>
    %5 = arith.addf %2, %4 : vector<8x64xf32>
    %6 = math.tanh %5 : vector<8x64xf32>
    %c0_5 = arith.constant 0 : index
    %c0_6 = arith.constant 0 : index
    %7 = vector.load %arg4[%c0_5, %c0_6] : memref<64x64xf32, #tpu.memory_space<vmem>>, vector<64x64xf32>
    %cst_7 = arith.constant dense<0.000000e+00> : vector<8x64xf32>
    %8 = tpu.matmul %6, %7, %cst_7 {dimension_numbers = #tpu.dot_dimension_numbers<[1], [0], [0], [1], [0, 0, 1, 1], [], []>, precision = #tpu.contract_precision<fp32>} : vector<8x64xf32>, vector<64x64xf32>, vector<8x64xf32> -> vector<8x64xf32>
    %c0_8 = arith.constant 0 : index
    %c0_9 = arith.constant 0 : index
    %9 = vector.load %arg5[%c0_8, %c0_9] : memref<1x64xf32, #tpu.memory_space<vmem>>, vector<1x64xf32>
    %10 = vector.broadcast %9 : vector<1x64xf32> to vector<8x64xf32>
    %11 = arith.addf %8, %10 : vector<8x64xf32>
    %12 = math.tanh %11 : vector<8x64xf32>
    %c0_10 = arith.constant 0 : index
    %c0_11 = arith.constant 0 : index
    %13 = vector.load %arg6[%c0_10, %c0_11] : memref<64x128xf32, #tpu.memory_space<vmem>>, vector<64x128xf32>
    %cst_12 = arith.constant dense<0.000000e+00> : vector<8x128xf32>
    %14 = tpu.matmul %12, %13, %cst_12 {dimension_numbers = #tpu.dot_dimension_numbers<[1], [0], [0], [1], [0, 0, 1, 1], [], []>, precision = #tpu.contract_precision<fp32>} : vector<8x64xf32>, vector<64x128xf32>, vector<8x128xf32> -> vector<8x128xf32>
    %c0_13 = arith.constant 0 : index
    %c0_14 = arith.constant 0 : index
    %15 = vector.load %arg7[%c0_13, %c0_14] : memref<1x128xf32, #tpu.memory_space<vmem>>, vector<1x128xf32>
    %16 = vector.broadcast %15 : vector<1x128xf32> to vector<8x128xf32>
    %17 = arith.addf %14, %16 : vector<8x128xf32>
    %18 = vector.extract_strided_slice %17 {offsets = [0, 0], sizes = [8, 4], strides = [1, 1]} : vector<8x128xf32> to vector<8x4xf32>
    %c0_15 = arith.constant 0 : index
    %c0_16 = arith.constant 0 : index
    %19 = vector.load %arg8[%c0_15, %c0_16] : memref<8x4xf32, #tpu.memory_space<vmem>>, vector<8x4xf32>
    tpu.vector_store %arg8[%c0_15, %c0_16], %18 {strides = array<i32>} : memref<8x4xf32, #tpu.memory_space<vmem>>, vector<8x4xf32>,
    %20 = vector.extract_strided_slice %17 {offsets = [0, 4], sizes = [8, 1], strides = [1, 1]} : vector<8x128xf32> to vector<8x1xf32>
    %c0_17 = arith.constant 0 : index
    %c0_18 = arith.constant 0 : index
    %21 = vector.load %arg9[%c0_17, %c0_18] : memref<8x1xf32, #tpu.memory_space<vmem>>, vector<8x1xf32>
    tpu.vector_store %arg9[%c0_17, %c0_18], %20 {strides = array<i32>} : memref<8x1xf32, #tpu.memory_space<vmem>>, vector<8x1xf32>,
    return
  }
  func.func @transform_0(%arg0: i32) -> (i32, i32) {
    %c0_i32 = arith.constant 0 : i32
    %c0_i32_0 = arith.constant 0 : i32
    return %arg0, %c0_i32 : i32, i32
  }
  func.func @transform_1(%arg0: i32) -> (i32, i32) {
    %c0_i32 = arith.constant 0 : i32
    %c0_i32_0 = arith.constant 0 : i32
    %c0_i32_1 = arith.constant 0 : i32
    return %c0_i32, %c0_i32_0 : i32, i32
  }
  func.func @transform_2(%arg0: i32) -> (i32, i32) {
    %c0_i32 = arith.constant 0 : i32
    %c0_i32_0 = arith.constant 0 : i32
    %c0_i32_1 = arith.constant 0 : i32
    return %c0_i32, %c0_i32_0 : i32, i32
  }
  func.func @transform_3(%arg0: i32) -> (i32, i32) {
    %c0_i32 = arith.constant 0 : i32
    %c0_i32_0 = arith.constant 0 : i32
    %c0_i32_1 = arith.constant 0 : i32
    return %c0_i32, %c0_i32_0 : i32, i32
  }
  func.func @transform_4(%arg0: i32) -> (i32, i32) {
    %c0_i32 = arith.constant 0 : i32
    %c0_i32_0 = arith.constant 0 : i32
    %c0_i32_1 = arith.constant 0 : i32
    return %c0_i32, %c0_i32_0 : i32, i32
  }
  func.func @transform_5(%arg0: i32) -> (i32, i32) {
    %c0_i32 = arith.constant 0 : i32
    %c0_i32_0 = arith.constant 0 : i32
    %c0_i32_1 = arith.constant 0 : i32
    return %c0_i32, %c0_i32_0 : i32, i32
  }
  func.func @transform_6(%arg0: i32) -> (i32, i32) {
    %c0_i32 = arith.constant 0 : i32
    %c0_i32_0 = arith.constant 0 : i32
    %c0_i32_1 = arith.constant 0 : i32
    return %c0_i32, %c0_i32_0 : i32, i32
  }
  func.func @transform_7(%arg0: i32) -> (i32, i32) {
    %c0_i32 = arith.constant 0 : i32
    %c0_i32_0 = arith.constant 0 : i32
    return %arg0, %c0_i32 : i32, i32
  }
  func.func @transform_8(%arg0: i32) -> (i32, i32) {
    %c0_i32 = arith.constant 0 : i32
    %c0_i32_0 = arith.constant 0 : i32
    return %arg0, %c0_i32 : i32, i32
  }
}

</mosaic_0001>

<bundles_post_ra>
// kernel: tpu_custom_call.1
= control target key start
LH: loop header
LB: loop body
LE: loop exit
PB: predicated region body
PF: predicated region fallthrough
CT: control target
= control target key end

     0   :  { %14 = vsyncpa [#allocation3], 0  ;;  %s1044_s0 = inlined_call_operand.hbm [shape: f32[8,8], index: 0, kind: input, shape index: {}]   ;;  %s1045_s1 = inlined_call_operand.hbm [shape: f32[8,64], index: 1, kind: input, shape index: {}]   ;;  %s1046_s2 = inlined_call_operand.vmem [shape: f32[1,64], index: 2, kind: input, shape index: {}]   ;;  %s1047_s3 = inlined_call_operand.hbm [shape: f32[64,64], index: 3, kind: input, shape index: {}]   ;;  %s1048_s4 = inlined_call_operand.vmem [shape: f32[1,64], index: 4, kind: input, shape index: {}]   ;;  %s1049_s5 = inlined_call_operand.hbm [shape: f32[64,128], index: 5, kind: input, shape index: {}]   ;;  %s1050_s6 = inlined_call_operand.vmem [shape: f32[1,128], index: 6, kind: input, shape index: {}]   ;;  %s1051_s7 = inlined_call_operand.vmem [shape: f32[8,4], index: 7, kind: output, shape index: {0}]   ;;  %s1052_s8 = inlined_call_operand.vmem [shape: f32[8,1], index: 8, kind: output, shape index: {1}]  }
   0x1   :  { %15 = vsyncpa [#allocation5], 0  ;;  %s33_s29 = sshll.u32 %s1045_s1, 4  ;;  %s34_s29 = int_to_ptr.hbm [resolvable:$true] %s33_s29 }
   0x2   :  { %16 = vsyncpa [#allocation8], 0  ;;  %s885_s30 = smov [#allocation4]   ;;  %s22_s12 = sshll.u32 %s1044_s0, 4  ;;  %s23_s12 = int_to_ptr.hbm [resolvable:$true] %s22_s12 }
   0x3   :  { %s35_s9 = sshll.u32 %s885_s30, 4  ;;  %s886_s13 = smov [#allocation2]   ;;  %s36_s9 = int_to_ptr.vmem [resolvable:$true] %s35_s9 }
   0x4   :  { %38 = dma.hbm_to_vmem [thread:$0]  %s34_s29, 128, %s36_s9, [#allocation5]  }
   0x5   :  { %s24_s14 = sshll.u32 %s886_s13, 4  ;;  %s45_s17 = sshll.u32 %s1047_s3, 4  ;;  %s25_s14 = int_to_ptr.vmem [resolvable:$true] %s24_s14  ;;  %s46_s17 = int_to_ptr.hbm [resolvable:$true] %s45_s17 }
   0x6   :  { %27 = dma.hbm_to_vmem [thread:$0]  %s23_s12, 128, %s25_s14, [#allocation3]  }
   0x7   :  { %s887_s1 = smov [#allocation6]   ;;  %s60_s21 = sshll.u32 %s1049_s5, 4  ;;  %s61_s21 = int_to_ptr.hbm [resolvable:$true] %s60_s21 }
   0x8   :  { %s47_s18 = sshll.u32 %s887_s1, 4  ;;  %s888_s22 = smov 128   ;;  %s48_s18 = int_to_ptr.vmem [resolvable:$true] %s47_s18 }
   0x9   :  { %s889_s0 = smov 8   ;;  %s890_s23 = smov [#allocation7]  }
   0xa   :  { %53 = dma.hbm_to_vmem [thread:$0]  %s46_s17, 1024, %s48_s18, [#allocation5], %s888_s22, %s888_s22, %s889_s0  }
   0xb   :  { %s62_s24 = sshll.u32 %s890_s23, 4  ;;  %s63_s24 = int_to_ptr.vmem [resolvable:$true] %s62_s24 }
   0xc   :  { %68 = dma.hbm_to_vmem [thread:$0]  %s61_s21, 1024, %s63_s24, [#allocation8], %s888_s22, %s888_s22, %s889_s0  }
   0xd   :  { %879 = dma.done.wait [#allocation3], 128  }
   0xe   :  { %880 = vsyncadd [#allocation3], 4294967168 }
   0xf   :  { %881 = dma.done.wait [#allocation5], 1152  }
  0x10   :  { %882 = vsyncadd [#allocation5], 4294966144 }
  0x11   :  { %883 = dma.done.wait [#allocation8], 1024  }
  0x12   :  { %884 = vsyncadd [#allocation8], 4294966272  ;;  %vm93_vm0 = vcmask 64512   ;;  %v88_v0 = vld [vmem:[#allocation4] sm:$0xff]  ;;  %v87_v1 = vld [vmem:[#allocation2] sm:$0xff]  ;;  %vm256_vm1 = vcmask 523264  }
  0x13   :  { %v112_v2 = vand.u32 4294901760, %v88_v0  ;;  %v95_v3 = vsel %vm93_vm0, %v87_v1, 0  ;;  %v251_v13 = vld [vmem:[#allocation6 + $0x38] sm:$0xff]  ;;  %v250_v15 = vld [vmem:[#allocation6 + $0x30] sm:$0xff]  ;;  %v249_v18 = vld [vmem:[#allocation6 + $0x28] sm:$0xff]  ;;  %vm750_vm2 = vcmask 31744  }
  0x14   :  { %v114_v4 = vand.u32 4294901760, %v95_v3  ;;  %v949_v14 = vand.u32 4294901760, %v251_v13  ;;  %v954_v17 = vand.u32 4294901760, %v250_v15  ;;  %v962_v21 = vand.u32 4294901760, %v249_v18  ;;  %v248_v22 = vld [vmem:[#allocation6 + $0x20] sm:$0xff]  ;;  %v247_v27 = vld [vmem:[#allocation6 + $0x18] sm:$0xff] }
  0x15   :  { %v139_v5 = vsub.f32 %v88_v0, %v112_v2  ;;  %113 = vmatpush.msra.mxu0 %v112_v2  ;;  %189 = vmatpush.msra.mxu3 %v112_v2  ;;  %v972_v26 = vand.u32 4294901760, %v248_v22  ;;  %v276_v32 = vand.u32 4294901760, %v247_v27  ;;  %v246_v33 = vld [vmem:[#allocation6 + $0x10] sm:$0xff]  ;;  %v245_v39 = vld [vmem:[#allocation6 + $0x8] sm:$0xff]  ;;  %v244_v45 = vld [vmem:[#allocation6] sm:$0xff]  ;;  %s891_s29 = smov 124  }
  0x16   :  { %v115_v6 = vsub.f32 %v95_v3, %v114_v4  ;;  %v952_v16 = vsub.f32 %v251_v13, %v949_v14  ;;  %v960_v20 = vsub.f32 %v250_v15, %v954_v17  ;;  %v970_v25 = vsub.f32 %v249_v18, %v962_v21  ;;  %v776_v61 = vld [vmem:[%s1046_s2] ss:$0 sm:$0xff] }
  0x17   :  { %166 = vmatpush.msra.mxu2 %v139_v5  ;;  %v140_v7 = vand.u32 4294901760, %v139_v5  ;;  %v320_v31 = vsub.f32 %v248_v22, %v972_v26  ;;  %v278_v37 = vand.u32 4294901760, %v246_v33  ;;  %v326_v38 = vsub.f32 %v247_v27, %v276_v32  ;;  %v503_v22 = vld [vmem:[#allocation7 + $0x28] sm:$0xff] }
  0x18   :  { %169 = vmatmul.f32.vlgmr.msra.gmra.mxu2 %v115_v6  ;;  %v116_v8 = vand.u32 4294901760, %v115_v6  ;;  %v303_v19 = vand.u32 4294901760, %v952_v16  ;;  %v309_v24 = vand.u32 4294901760, %v960_v20  ;;  %v315_v30 = vand.u32 4294901760, %v970_v25 }
  0x19   :  { %215 = vmatpush.msrb.mxu0 %v140_v7  ;;  %v141_v9 = vsub.f32 %v139_v5, %v140_v7  ;;  %269 = vmatpush.msrb.mxu2 %v949_v14  ;;  %v321_v36 = vand.u32 4294901760, %v320_v31  ;;  %v332_v42 = vsub.f32 %v246_v33, %v278_v37  ;;  %v280_v43 = vand.u32 4294901760, %v245_v39 }
  0x1a   :  { %v117_v10 = vsub.f32 %v115_v6, %v116_v8  ;;  %193 = vmatmul.f32.vlgmr.msra.gmra.mxu3 %v116_v8  ;;  %v304_v23 = vsub.f32 %v952_v16, %v303_v19  ;;  %v310_v29 = vsub.f32 %v960_v20, %v309_v24  ;;  %v316_v35 = vsub.f32 %v970_v25, %v315_v30 }
  0x1b   :  { %v142_v11 = vand.u32 4294901760, %v141_v9  ;;  %271 = vmatpush.msrb.mxu2 %v954_v17  ;;  %v322_v41 = vsub.f32 %v320_v31, %v321_v36  ;;  %v327_v44 = vand.u32 4294901760, %v326_v38  ;;  %v333_v47 = vand.u32 4294901760, %v332_v42 }
  0x1c   :  { %v118_v12 = vand.u32 4294901760, %v117_v10  ;;  %v305_v28 = vand.u32 4294901760, %v304_v23  ;;  %v311_v34 = vand.u32 4294901760, %v310_v29  ;;  %v317_v40 = vand.u32 4294901760, %v316_v35 }
  0x1d   :  { %143 = vmatpush.msra.mxu1 %v142_v11  ;;  %273 = vmatpush.msrb.mxu2 %v962_v21  ;;  %v323_v46 = vand.u32 4294901760, %v322_v41  ;;  %v338_v48 = vsub.f32 %v245_v39, %v280_v43  ;;  %v282_v49 = vand.u32 4294901760, %v244_v45  ;;  %v328_v50 = vsub.f32 %v326_v38, %v327_v44 }
  0x1e   :  { %119 = vmatmul.f32.vlgmr.msra.gmra.mxu0 %v118_v12  ;;  %145 = vmatmul.f32.vlgmr.msra.gmra.mxu1 %v114_v4  ;;  %v334_v51 = vsub.f32 %v332_v42, %v333_v47  ;;  %vm756_vm3 = vcmask 7168  }
  0x1f   :  { %237 = vmatpush.msrb.mxu1 %v112_v2  ;;  %364 = vmatpush.msra.mxu0 %v952_v16  ;;  %v339_v52 = vand.u32 4294901760, %v338_v48  ;;  %v344_v53 = vsub.f32 %v244_v45, %v282_v49  ;;  %v329_v54 = vand.u32 4294901760, %v328_v50 }
  0x20   :  { %275 = vmatpush.msrb.mxu2 %v972_v26  ;;  %306 = vmatpush.msrb.mxu3 %v305_v28  ;;  %v335_v55 = vand.u32 4294901760, %v334_v51 }
  0x21   :  { %401 = vmatpush.msra.mxu1 %v949_v14  ;;  %367 = vmatpush.msra.mxu0 %v960_v20  ;;  %v340_v56 = vsub.f32 %v338_v48, %v339_v52  ;;  %v345_v57 = vand.u32 4294901760, %v344_v53 }
  0x22   :  { %277 = vmatpush.msrb.mxu2 %v276_v32  ;;  %312 = vmatpush.msrb.mxu3 %v311_v34 }
  0x23   :  { %403 = vmatpush.msra.mxu1 %v954_v17  ;;  %370 = vmatpush.msra.mxu0 %v970_v25  ;;  %v341_v58 = vand.u32 4294901760, %v340_v56  ;;  %v346_v59 = vsub.f32 %v344_v53, %v345_v57  ;;  %v1005_v25 = vand.u32 4294901760, %v503_v22 }
  0x24   :  { %279 = vmatpush.msrb.mxu2 %v278_v37  ;;  %318 = vmatpush.msrb.mxu3 %v317_v40 }
  0x25   :  { %405 = vmatpush.msra.mxu1 %v962_v21  ;;  %373 = vmatpush.msra.mxu0 %v320_v31  ;;  %v347_v60 = vand.u32 4294901760, %v346_v59  ;;  %v1013_v29 = vsub.f32 %v503_v22, %v1005_v25  ;;  %v501_v31 = vld [vmem:[#allocation7 + $0x18] sm:$0xff] }
  0x26   :  { %217 = vmatmul.f32.vlgmr.msrb.gmra.mxu0 %v114_v4  ;;  %239 = vmatmul.f32.vlgmr.msrb.gmra.mxu1 %v114_v4 }
  0x27   :  { %407 = vmatpush.msra.mxu1 %v972_v26  ;;  %376 = vmatpush.msra.mxu0 %v326_v38  ;;  %v568_v34 = vand.u32 4294901760, %v1013_v29 }
  0x28   :  { %281 = vmatpush.msrb.mxu2 %v280_v43  ;;  %324 = vmatpush.msrb.mxu3 %v323_v46 }
  0x29   :  { %409 = vmatpush.msra.mxu1 %v276_v32  ;;  %379 = vmatpush.msra.mxu0 %v332_v42  ;;  %v569_v39 = vsub.f32 %v1013_v29, %v568_v34 }
  0x2a   :  { %283 = vmatpush.msrb.mxu2 %v282_v49  ;;  %330 = vmatpush.msrb.mxu3 %v329_v54 }
  0x2b   :  { %411 = vmatpush.msra.mxu1 %v278_v37  ;;  %382 = vmatpush.msra.mxu0 %v338_v48 }
  0x2c   :  { %434 = vmatpush.msra.mxu2 %v303_v19  ;;  %336 = vmatpush.msrb.mxu3 %v335_v55  ;;  %v504_v19 = vld [vmem:[#allocation7 + $0x30] sm:$0xff] }
  0x2d   :  { %413 = vmatpush.msra.mxu1 %v280_v43  ;;  %385 = vmatpush.msra.mxu0 %v344_v53 }
  0x2e   :  { %438 = vmatpush.msra.mxu2 %v309_v24  ;;  %342 = vmatpush.msrb.mxu3 %v341_v58 }
  0x2f   :  { %415 = vmatpush.msra.mxu1 %v282_v49 }
  0x30   :  { %442 = vmatpush.msra.mxu2 %v315_v30  ;;  %348 = vmatpush.msrb.mxu3 %v347_v60 }
  0x32   :  { %446 = vmatpush.msra.mxu2 %v321_v36  ;;  %477 = vmatpush.msra.mxu3 %v949_v14  ;;  %v529_v36 = vand.u32 4294901760, %v501_v31 }
  0x34   :  { %450 = vmatpush.msra.mxu2 %v327_v44  ;;  %479 = vmatpush.msra.mxu3 %v954_v17  ;;  %v505_v17 = vld [vmem:[#allocation7 + $0x38] sm:$0xff]  ;;  %v579_v42 = vsub.f32 %v501_v31, %v529_v36  ;;  %v570_v44 = vand.u32 4294901760, %v569_v39 }
  0x35   :  { %v992_v18 = vand.u32 4294901760, %v505_v17 }
  0x36   :  { %454 = vmatpush.msra.mxu2 %v333_v47  ;;  %481 = vmatpush.msra.mxu3 %v962_v21  ;;  %v997_v21 = vand.u32 4294901760, %v504_v19  ;;  %v580_v48 = vand.u32 4294901760, %v579_v42 }
  0x37   :  { %v995_v20 = vsub.f32 %v505_v17, %v992_v18  ;;  %522 = vmatpush.msrb.mxu0 %v992_v18 }
  0x38   :  { %458 = vmatpush.msra.mxu2 %v339_v52  ;;  %483 = vmatpush.msra.mxu3 %v972_v26  ;;  %v1003_v24 = vsub.f32 %v504_v19, %v997_v21  ;;  %v502_v26 = vld [vmem:[#allocation7 + $0x20] sm:$0xff]  ;;  %v581_v54 = vsub.f32 %v579_v42, %v580_v48 }
  0x39   :  { %v556_v23 = vand.u32 4294901760, %v995_v20  ;;  %524 = vmatpush.msrb.mxu0 %v997_v21  ;;  %v1015_v30 = vand.u32 4294901760, %v502_v26 }
  0x3a   :  { %462 = vmatpush.msra.mxu2 %v345_v57  ;;  %485 = vmatpush.msra.mxu3 %v276_v32  ;;  %v562_v28 = vand.u32 4294901760, %v1003_v24  ;;  %v582_v58 = vand.u32 4294901760, %v581_v54 }
  0x3b   :  { %v557_v27 = vsub.f32 %v995_v20, %v556_v23  ;;  %526 = vmatpush.msrb.mxu0 %v1005_v25  ;;  %v573_v35 = vsub.f32 %v502_v26, %v1015_v30 }
  0x3c   :  { %487 = vmatpush.msra.mxu3 %v278_v37  ;;  %v563_v33 = vsub.f32 %v1003_v24, %v562_v28  ;;  %v500_v37 = vld [vmem:[#allocation7 + $0x10] sm:$0xff] }
  0x3d   :  { %v558_v32 = vand.u32 4294901760, %v557_v27  ;;  %528 = vmatpush.msrb.mxu0 %v1015_v30  ;;  %v574_v40 = vand.u32 4294901760, %v573_v35  ;;  %v531_v41 = vand.u32 4294901760, %v500_v37 }
  0x3e   :  { %489 = vmatpush.msra.mxu3 %v280_v43  ;;  %v564_v38 = vand.u32 4294901760, %v563_v33  ;;  %v499_v43 = vld [vmem:[#allocation7 + $0x8] sm:$0xff] }
  0x3f   :  { %559 = vmatpush.msrb.mxu1 %v558_v32  ;;  %530 = vmatpush.msrb.mxu0 %v529_v36  ;;  %v575_v45 = vsub.f32 %v573_v35, %v574_v40  ;;  %v585_v46 = vsub.f32 %v500_v37, %v531_v41  ;;  %v533_v47 = vand.u32 4294901760, %v499_v43 }
  0x40   :  { %491 = vmatpush.msra.mxu3 %v282_v49  ;;  %v498_v49 = vld [vmem:[#allocation7] sm:$0xff] }
  0x41   :  { %565 = vmatpush.msrb.mxu1 %v564_v38  ;;  %532 = vmatpush.msrb.mxu0 %v531_v41  ;;  %v576_v50 = vand.u32 4294901760, %v575_v45  ;;  %v586_v51 = vand.u32 4294901760, %v585_v46  ;;  %v591_v52 = vsub.f32 %v499_v43, %v533_v47  ;;  %v535_v53 = vand.u32 4294901760, %v498_v49 }
  0x43   :  { %571 = vmatpush.msrb.mxu1 %v570_v44  ;;  %534 = vmatpush.msrb.mxu0 %v533_v47  ;;  %v587_v55 = vsub.f32 %v585_v46, %v586_v51  ;;  %v592_v56 = vand.u32 4294901760, %v591_v52  ;;  %v597_v57 = vsub.f32 %v498_v49, %v535_v53 }
  0x45   :  { %577 = vmatpush.msrb.mxu1 %v576_v50  ;;  %536 = vmatpush.msrb.mxu0 %v535_v53  ;;  %v588_v59 = vand.u32 4294901760, %v587_v55  ;;  %v593_v60 = vsub.f32 %v591_v52, %v592_v56 }
  0x47   :  { %583 = vmatpush.msrb.mxu1 %v582_v58 }
  0x49   :  { %589 = vmatpush.msrb.mxu1 %v588_v59 }
  0x9b   :  { %v120_v62 = vpop.f32.mrf.mxu0  ;;  %v146_v63 = vpop.f32.mrf.mxu1 }
  0x9c   :  { %v121_v0 = vadd.f32 %v776_v61, %v120_v62  ;;  %v170_v1 = vpop.f32.mrf.mxu2  ;;  %v598_v61 = vand.u32 4294901760, %v597_v57  ;;  %v594_v62 = vand.u32 4294901760, %v593_v60 }
  0x9d   :  { %v194_v3 = vpop.f32.mrf.mxu3 }
  0x9e   :  { %v147_v2 = vadd.f32 %v146_v63, %v121_v0  ;;  %v599_v63 = vsub.f32 %v597_v57, %v598_v61  ;;  %595 = vmatpush.msrb.mxu1 %v594_v62 }
  0xa0   :  { %v171_v4 = vadd.f32 %v170_v1, %v147_v2  ;;  %v600_v0 = vand.u32 4294901760, %v599_v63  ;;  %v777_v1 = vld [vmem:[%s1048_s4] ss:$0 sm:$0xff] }
  0xa2   :  { %v195_v5 = vadd.f32 %v194_v3, %v171_v4  ;;  %601 = vmatpush.msrb.mxu1 %v600_v0 }
  0xa3   :  { %v218_v6 = vpop.f32.mrf.mxu0  ;;  %v240_v7 = vpop.f32.mrf.mxu1 }
  0xa4   :  { %v219_v8 = vadd.f32 %v218_v6, %v195_v5 }
  0xa6   :  { %v241_v9 = vadd.f32 %v240_v7, %v219_v8 }
  0xa8   :  { %779 = vtanh.f32 %v241_v9 }
  0xae   :  { %v780_v10 = vpop.eup %779 }
  0xaf   :  { %v258_v11 = vsel %vm256_vm1, %v780_v10, 0 }
  0xb0   :  { %v284_v12 = vand.u32 4294901760, %v258_v11 }
  0xb2   :  { %350 = vmatmul.f32.vlgmr.msrb.gmra.mxu3 %v284_v12  ;;  %v285_v13 = vsub.f32 %v258_v11, %v284_v12 }
  0xb3   :  { %654 = vmatpush.msrb.mxu3 %v992_v18 }
  0xb4   :  { %388 = vmatmul.f32.vlgmr.msra.gmra.mxu0 %v285_v13  ;;  %v286_v14 = vand.u32 4294901760, %v285_v13 }
  0xb5   :  { %656 = vmatpush.msrb.mxu3 %v997_v21  ;;  %687 = vmatpush.msra.mxu0 %v556_v23 }
  0xb6   :  { %419 = vmatmul.f32.vlgmr.msra.gmra.mxu1 %v286_v14  ;;  %v287_v15 = vsub.f32 %v285_v13, %v286_v14 }
  0xb7   :  { %658 = vmatpush.msrb.mxu3 %v1005_v25  ;;  %691 = vmatpush.msra.mxu0 %v562_v28 }
  0xb8   :  { %v288_v16 = vand.u32 4294901760, %v287_v15  ;;  %730 = vmatpush.msra.mxu1 %v992_v18 }
  0xb9   :  { %660 = vmatpush.msrb.mxu3 %v1015_v30  ;;  %695 = vmatpush.msra.mxu0 %v568_v34 }
  0xba   :  { %289 = vmatmul.f32.vlgmr.msrb.gmra.mxu2 %v288_v16  ;;  %493 = vmatmul.f32.vlgmr.msra.gmra.mxu3 %v284_v12 }
  0xbb   :  { %617 = vmatpush.msrb.mxu2 %v995_v20  ;;  %662 = vmatpush.msrb.mxu3 %v529_v36 }
  0xbc   :  { %699 = vmatpush.msra.mxu0 %v574_v40  ;;  %732 = vmatpush.msra.mxu1 %v997_v21  ;;  %v778_v21 = vld [vmem:[%s1050_s6] ss:$0 sm:$0xff] }
  0xbd   :  { %620 = vmatpush.msrb.mxu2 %v1003_v24  ;;  %664 = vmatpush.msrb.mxu3 %v531_v41 }
  0xbe   :  { %703 = vmatpush.msra.mxu0 %v580_v48  ;;  %734 = vmatpush.msra.mxu1 %v1005_v25 }
  0xbf   :  { %623 = vmatpush.msrb.mxu2 %v1013_v29  ;;  %666 = vmatpush.msrb.mxu3 %v533_v47 }
  0xc0   :  { %707 = vmatpush.msra.mxu0 %v586_v51  ;;  %736 = vmatpush.msra.mxu1 %v1015_v30 }
  0xc1   :  { %626 = vmatpush.msrb.mxu2 %v573_v35  ;;  %668 = vmatpush.msrb.mxu3 %v535_v53 }
  0xc2   :  { %464 = vmatmul.f32.vlgmr.msra.gmra.mxu2 %v284_v12  ;;  %711 = vmatpush.msra.mxu0 %v592_v56 }
  0xc3   :  { %629 = vmatpush.msrb.mxu2 %v579_v42  ;;  %738 = vmatpush.msra.mxu1 %v529_v36 }
  0xc4   :  { %715 = vmatpush.msra.mxu0 %v598_v61 }
  0xc5   :  { %632 = vmatpush.msrb.mxu2 %v585_v46  ;;  %740 = vmatpush.msra.mxu1 %v531_v41 }
  0xc7   :  { %635 = vmatpush.msrb.mxu2 %v591_v52  ;;  %742 = vmatpush.msra.mxu1 %v533_v47 }
  0xc9   :  { %638 = vmatpush.msrb.mxu2 %v597_v57  ;;  %744 = vmatpush.msra.mxu1 %v535_v53 }
 0x131   :  { %v389_v6 = vpop.f32.mrf.mxu0 }
 0x133   :  { %v420_v8 = vpop.f32.mrf.mxu1 }
 0x135   :  { %v351_v2 = vpop.f32.mrf.mxu3 }
 0x13d   :  { %v290_v3 = vpop.f32.mrf.mxu2  ;;  %v494_v12 = vpop.f32.mrf.mxu3 }
 0x13e   :  { %v291_v4 = vadd.f32 %v777_v1, %v290_v3 }
 0x140   :  { %v352_v5 = vadd.f32 %v351_v2, %v291_v4 }
 0x142   :  { %v390_v7 = vadd.f32 %v389_v6, %v352_v5 }
 0x144   :  { %v421_v9 = vadd.f32 %v420_v8, %v390_v7 }
 0x145   :  { %v465_v10 = vpop.f32.mrf.mxu2 }
 0x146   :  { %v466_v11 = vadd.f32 %v465_v10, %v421_v9 }
 0x148   :  { %v495_v13 = vadd.f32 %v494_v12, %v466_v11 }
 0x14a   :  { %781 = vtanh.f32 %v495_v13 }
 0x150   :  { %v782_v14 = vpop.eup %781 }
 0x151   :  { %v511_v15 = vsel %vm256_vm1, %v782_v14, 0 }
 0x152   :  { %v537_v16 = vand.u32 4294901760, %v511_v15 }
 0x154   :  { %603 = vmatmul.f32.vlgmr.msrb.gmra.mxu1 %v537_v16  ;;  %v538_v17 = vsub.f32 %v511_v15, %v537_v16 }
 0x156   :  { %641 = vmatmul.f32.vlgmr.msrb.gmra.mxu2 %v538_v17  ;;  %v539_v18 = vand.u32 4294901760, %v538_v17 }
 0x158   :  { %672 = vmatmul.f32.vlgmr.msrb.gmra.mxu3 %v539_v18  ;;  %v540_v19 = vsub.f32 %v538_v17, %v539_v18 }
 0x15a   :  { %v541_v20 = vand.u32 4294901760, %v540_v19 }
 0x15c   :  { %542 = vmatmul.f32.vlgmr.msrb.gmra.mxu0 %v541_v20  ;;  %746 = vmatmul.f32.vlgmr.msra.gmra.mxu1 %v537_v16 }
 0x164   :  { %717 = vmatmul.f32.vlgmr.msra.gmra.mxu0 %v537_v16 }
 0x1d1   :  { %v604_v22 = vpop.f32.mrf.mxu1 }
 0x1d9   :  { %v543_v23 = vpop.f32.mrf.mxu0  ;;  %v642_v26 = vpop.f32.mrf.mxu2 }
 0x1da   :  { %v544_v24 = vadd.f32 %v778_v21, %v543_v23  ;;  %v747_v32 = vpop.f32.mrf.mxu1 }
 0x1db   :  { %v673_v28 = vpop.f32.mrf.mxu3 }
 0x1dc   :  { %v605_v25 = vadd.f32 %v604_v22, %v544_v24 }
 0x1de   :  { %v643_v27 = vadd.f32 %v642_v26, %v605_v25 }
 0x1e0   :  { %v674_v29 = vadd.f32 %v673_v28, %v643_v27 }
 0x1e1   :  { %v718_v30 = vpop.f32.mrf.mxu0 }
 0x1e2   :  { %v719_v31 = vadd.f32 %v718_v30, %v674_v29 }
 0x1e4   :  { %v748_v33 = vadd.f32 %v747_v32, %v719_v31 }
 0x1e6   :  { %751 = vst.msk [vmem:[%s1051_s7] sm:$0xff] %vm750_vm2, %v748_v33  ;;  %753 = vrot.lane.b32.xlu0 %v748_v33, %s891_s29 }
 0x258   :  { %v754_v34 = vpop.permute.xlu0 %753 }
 0x259   :  { %757 = vst.msk [vmem:[%s1052_s8] sm:$0xff] %vm756_vm3, %v754_v34 }
 0x25a   :  { %766 = vsyncpa [#allocation3], 1 }
 0x25b   :  { %767 = vsyncpa [#allocation5], 1 }
 0x25c   :  { %768 = vsyncpa [#allocation8], 1 }

</bundles_post_ra>
